<compile_context>
chip_gen: v7x
topology: tpu7x:2x2x1
jax: 0.10.0
libtpu: 0.0.40
codegen_flags: <defaults>
</compile_context>

<pallas_src>
import functools

import jax
import jax.numpy as jnp
from jax.experimental import pallas as pl
from jax.experimental.pallas import tpu as pltpu

EPS = 1e-6


def _round_up(n: int, m: int) -> int:
    return ((n + m - 1) // m) * m


def _round_down(n: int, m: int) -> int:
    return (n // m) * m


def _gem_kernel(p_ref, x_ref, o_ref, *, eps, inv_hw, int_p, tile_hw, hw, hw_ragged):
    # p_ref: SMEM (1,) f32, scalar-prefetched once (unused on the int_p fast path)
    # x_ref: VMEM (tile_r, tile_hw) block of the (BC, HW) slab
    # o_ref: VMEM (tile_r, 1) f32 block; doubles as the across-HW accumulator
    j = pl.program_id(1)

    @pl.when(j == 0)
    def _init():
        o_ref[...] = jnp.zeros_like(o_ref)

    x = x_ref[...].astype(jnp.float32)
    x = jnp.maximum(x, eps)                       # clamp(min=eps)  ->  x > 0

    if int_p is not None:
        # Static integer p: pure-VPU pow (no EUP transcendentals).
        xp = x
        for _ in range(int_p - 1):
            xp = xp * x
    else:
        # General learned p: x > 0 after clamp, so pow(x, p) == exp(p*log(x)).
        xp = jnp.exp(p_ref[0] * jnp.log(x))

    if hw_ragged:
        # Last HW tile extends past HW: zero the padded columns before the sum.
        col = jax.lax.broadcasted_iota(jnp.int32, xp.shape, 1)
        xp = jnp.where(col + j * tile_hw < hw, xp, 0.0)

    o_ref[...] += jnp.sum(xp, axis=-1, keepdims=True)   # spatial partial sum

    @pl.when(j == pl.num_programs(1) - 1)
    def _finalize():
        inv_p = (1.0 / int_p) if int_p is not None else (1.0 / p_ref[0])
        mean = o_ref[...] * inv_hw
        o_ref[...] = jnp.exp(jnp.log(mean) * inv_p)      # mean ** (1/p)


def gem_pool(x: jax.Array, p, eps: float = EPS) -> jax.Array:
    """GeM pooling. x: (bs, ch, h, w); p: shape-(1,) parameter or static scalar.

    Returns (bs, ch) in float32.
    """
    bs, ch, h, w = x.shape
    BC, HW = bs * ch, h * w
    x2d = x.reshape(BC, HW)
    itemsize = jnp.dtype(x2d.dtype).itemsize

    # Static-integer-p fast path (e.g. default GeM p=3): no per-element exp/log.
    int_p = None
    if isinstance(p, (int, float)) and float(p) == round(float(p)) and 1 <= round(float(p)) <= 16:
        int_p = int(round(float(p)))
    p_arr = jnp.asarray(p, dtype=jnp.float32).reshape(1)

    BUDGET = 8 * 1024 * 1024                      # bytes per input buffer (x2 when double-buffered)
    hw_lanes = _round_up(HW, 128)                 # lane-padded VMEM footprint of one row
    rows_fit = BUDGET // (hw_lanes * itemsize)

    if rows_fit >= 8:
        # Whole HW per step (contiguous DMA); tile the row axis only.
        tile_hw, num_hw = HW, 1
        if BC <= 8:
            tile_r = BC                           # single tile == full dim (tiny input)
        else:
            # Aim for >=4 row tiles (2 per v7x TensorCore, keeps the pipeline
            # busy on all chips) but never exceed the per-buffer budget.
            tile_r = min(max(_round_down(rows_fit, 8), 8),
                         max(8, _round_up(pl.cdiv(BC, 4), 8)))
    else:
        # A handful of rows already overflows the budget: split the reduction
        # axis across the grid and accumulate into the resident output block.
        tile_r = min(8, BC)
        cols_fit = BUDGET // (8 * itemsize)
        tile_hw = max(128, _round_down(cols_fit, 128))
        num_hw = pl.cdiv(HW, tile_hw)

    num_rows = pl.cdiv(BC, tile_r)
    hw_ragged = (num_hw > 1) and (HW % tile_hw != 0)

    kernel = functools.partial(
        _gem_kernel,
        eps=float(eps),
        inv_hw=1.0 / HW,
        int_p=int_p,
        tile_hw=tile_hw,
        hw=HW,
        hw_ragged=hw_ragged,
    )

    cost = pl.CostEstimate(
        flops=(2 + (int_p - 1 if int_p is not None else 1)) * BC * HW,
        transcendentals=(0 if int_p is not None else 2 * BC * HW) + 2 * BC,
        bytes_accessed=BC * HW * itemsize + BC * 4 + 4,
    )

    out = pl.pallas_call(
        kernel,
        out_shape=jax.ShapeDtypeStruct((BC, 1), jnp.float32),
        grid_spec=pltpu.PrefetchScalarGridSpec(
            num_scalar_prefetch=1,                 # p lives in SMEM for all steps
            grid=(num_rows, num_hw),
            in_specs=[pl.BlockSpec((tile_r, tile_hw), lambda i, j, p_sm: (i, j))],
            # Output block index is independent of j -> stays VMEM-resident
            # across the HW axis and acts as the accumulator.
            out_specs=pl.BlockSpec((tile_r, 1), lambda i, j, p_sm: (i, 0)),
        ),
        compiler_params=pltpu.CompilerParams(
            dimension_semantics=("parallel", "arbitrary"),
            vmem_limit_bytes=32 * 1024 * 1024,
        ),
        cost_estimate=cost,
    )(p_arr, x2d)

    return out.reshape(bs, ch)


if __name__ == "__main__":
    key = jax.random.PRNGKey(0)
    bs, ch, h, w = 2, 4, 16, 16
    x = jax.random.uniform(key, (bs, ch, h, w), dtype=jnp.float32)

    # Reference (plain JAX), matching the PyTorch module with p = ones(1) * 3.
    p = jnp.ones((1,), dtype=jnp.float32) * 3.0
    ref = jnp.mean(jnp.maximum(x, EPS) ** p[0], axis=(2, 3)) ** (1.0 / p[0])

    # 1) Learned-parameter path (p is a runtime array, like nn.Parameter).
    y = gem_pool(x, p)
    jax.block_until_ready(y)
    assert y.shape == (bs, ch)
    assert jnp.allclose(y, ref, rtol=1e-5, atol=1e-6), (y, ref)

    # 2) Static integer-p fast path (default GeM p=3): VPU-only pow, no EUP.
    y_fast = gem_pool(x, 3)
    jax.block_until_ready(y_fast)
    assert jnp.allclose(y_fast, ref, rtol=1e-5, atol=1e-6), (y_fast, ref)

    print("KERNEL_OK")
</pallas_src>

<mosaic_0001>
module attributes {stable_mosaic.version = 11 : i64} {
  func.func @_gem_kernel(%arg0: i32, %arg1: i32, %arg2: memref<1xf32, #tpu.memory_space<smem>>, %arg3: memref<8x256xf32, #tpu.memory_space<vmem>>, %arg4: memref<8x1xf32, #tpu.memory_space<vmem>>) attributes {dimension_semantics = [#tpu.dimension_semantics<parallel>, #tpu.dimension_semantics<arbitrary>], iteration_bounds = array<i64: 1, 1>, scalar_prefetch = 1 : i64, scratch_operands = 0 : i64, tpu.core_type = #tpu.core_type<tc>, window_params = [{transform_indices = @transform_0, window_bounds = array<i64: 8, 256>}, {transform_indices = @transform_1, window_bounds = array<i64: 8, 1>}]} {
    %c0_i32 = arith.constant 0 : i32
    %0 = arith.cmpi eq, %arg1, %c0_i32 : i32
    %1 = arith.extui %0 : i1 to i32
    %c0_i32_0 = arith.constant 0 : i32
    %2 = arith.cmpi ne, %1, %c0_i32_0 : i32
    scf.if %2 {
      %cst_10 = arith.constant 0.000000e+00 : f32
      %19 = vector.broadcast %cst_10 : f32 to vector<8x1xf32>
      %c0_11 = arith.constant 0 : index
      %c0_12 = arith.constant 0 : index
      %20 = vector.load %arg4[%c0_11, %c0_12] : memref<8x1xf32, #tpu.memory_space<vmem>>, vector<8x1xf32>
      tpu.vector_store %arg4[%c0_11, %c0_12], %19 {strides = array<i32>} : memref<8x1xf32, #tpu.memory_space<vmem>>, vector<8x1xf32>,
    } else {
    }
    %c0 = arith.constant 0 : index
    %c0_1 = arith.constant 0 : index
    %3 = vector.load %arg3[%c0, %c0_1] : memref<8x256xf32, #tpu.memory_space<vmem>>, vector<8x256xf32>
    %cst = arith.constant 9.99999997E-7 : f32
    %4 = vector.broadcast %cst : f32 to vector<8x256xf32>
    %5 = arith.maximumf %3, %4 : vector<8x256xf32>
    %c0_2 = arith.constant 0 : index
    %6 = memref.load %arg2[%c0_2] : memref<1xf32, #tpu.memory_space<smem>>
    %7 = math.log %5 : vector<8x256xf32>
    %8 = vector.broadcast %6 : f32 to vector<8x256xf32>
    %9 = arith.mulf %8, %7 : vector<8x256xf32>
    %10 = math.exp %9 : vector<8x256xf32>
    %c0_3 = arith.constant 0 : index
    %c0_4 = arith.constant 0 : index
    %11 = vector.load %arg4[%c0_3, %c0_4] : memref<8x1xf32, #tpu.memory_space<vmem>>, vector<8x1xf32>
    %cst_5 = arith.constant dense<0.000000e+00> : vector<8xf32>
    %12 = vector.multi_reduction <add>, %10, %cst_5 [1] : vector<8x256xf32> to vector<8xf32>
    %13 = vector.shape_cast %12 : vector<8xf32> to vector<8x1xf32>
    %14 = arith.addf %11, %13 : vector<8x1xf32>
    %c0_6 = arith.constant 0 : index
    %c0_7 = arith.constant 0 : index
    %15 = vector.load %arg4[%c0_6, %c0_7] : memref<8x1xf32, #tpu.memory_space<vmem>>, vector<8x1xf32>
    tpu.vector_store %arg4[%c0_6, %c0_7], %14 {strides = array<i32>} : memref<8x1xf32, #tpu.memory_space<vmem>>, vector<8x1xf32>,
    %c0_i32_8 = arith.constant 0 : i32
    %16 = arith.cmpi eq, %arg1, %c0_i32_8 : i32
    %17 = arith.extui %16 : i1 to i32
    %c0_i32_9 = arith.constant 0 : i32
    %18 = arith.cmpi ne, %17, %c0_i32_9 : i32
    scf.if %18 {
      %c0_10 = arith.constant 0 : index
      %19 = memref.load %arg2[%c0_10] : memref<1xf32, #tpu.memory_space<smem>>
      %cst_11 = arith.constant 1.000000e+00 : f32
      %20 = arith.divf %cst_11, %19 : f32
      %c0_12 = arith.constant 0 : index
      %c0_13 = arith.constant 0 : index
      %21 = vector.load %arg4[%c0_12, %c0_13] : memref<8x1xf32, #tpu.memory_space<vmem>>, vector<8x1xf32>
      %cst_14 = arith.constant 3.906250e-03 : f32
      %22 = vector.broadcast %cst_14 : f32 to vector<8x1xf32>
      %23 = arith.mulf %21, %22 : vector<8x1xf32>
      %24 = math.log %23 : vector<8x1xf32>
      %25 = vector.broadcast %20 : f32 to vector<8x1xf32>
      %26 = arith.mulf %24, %25 : vector<8x1xf32>
      %27 = math.exp %26 : vector<8x1xf32>
      %c0_15 = arith.constant 0 : index
      %c0_16 = arith.constant 0 : index
      %28 = vector.load %arg4[%c0_15, %c0_16] : memref<8x1xf32, #tpu.memory_space<vmem>>, vector<8x1xf32>
      tpu.vector_store %arg4[%c0_15, %c0_16], %27 {strides = array<i32>} : memref<8x1xf32, #tpu.memory_space<vmem>>, vector<8x1xf32>,
    } else {
    }
    return
  }
  func.func @transform_0(%arg0: i32, %arg1: i32, %arg2: memref<1xf32, #tpu.memory_space<smem>>) -> (i32, i32) {
    %c0_i32 = arith.constant 0 : i32
    return %arg0, %arg1 : i32, i32
  }
  func.func @transform_1(%arg0: i32, %arg1: i32, %arg2: memref<1xf32, #tpu.memory_space<smem>>) -> (i32, i32) {
    %c0_i32 = arith.constant 0 : i32
    %c0_i32_0 = arith.constant 0 : i32
    return %arg0, %c0_i32 : i32, i32
  }
}

</mosaic_0001>

<bundles_post_ra>
// kernel: tpu_custom_call.1
= control target key start
LH: loop header
LB: loop body
LE: loop exit
PB: predicated region body
PF: predicated region fallthrough
CT: control target
= control target key end

     0   :  { %8 = vsyncpa [#allocation5], 0  ;;  %s114_s9 = smov [#allocation4]   ;;  %s164_s0 = inlined_call_operand.<no memory space> [shape: f32[1], index: 0, kind: input, shape index: {}]   ;;  %s165_s1 = inlined_call_operand.hbm [shape: f32[8,256], index: 1, kind: input, shape index: {}]   ;;  %s166_s2 = inlined_call_operand.vmem [shape: f32[8,1], index: 2, kind: output, shape index: {}]  }
   0x1   :  { %s15_s10 = sshll.u32 %s114_s9, 4  ;;  %s90_s13 = scalar_lea.hbm %s165_s1, 256  ;;  %s16_s10 = int_to_ptr.vmem [resolvable:$true] %s15_s10 }
   0x2   :  { %p91_p0 = scmp.ne.s32.totalorder %s165_s1, %s90_s13  ;;  %p94_p1 = scmp.lt.u32.totalorder %s90_s13, %s165_s1 }
   0x4   :  { %p96_p2 = pnand %p94_p1, %p91_p0 }
   0x6   :  { %99 = shalt.err (!%p96_p2)
}
   0x7   :  { %s100_s18 = scalar_lea.vmem %s16_s10, 256  ;;  %p105_p4 = scmp.lt.s32.totalorder %s16_s10, %s16_s10 }
   0x8   :  { %p101_p3 = scmp.ne.s32.totalorder %s16_s10, %s100_s18  ;;  %p106_p5 = scmp.lt.s32.totalorder %s100_s18, %s100_s18 }
   0xa   :  { %p107_p6 = por %p106_p5, %p105_p4 }
   0xc   :  { %p108_p7 = pnand %p107_p6, %p101_p3 }
   0xe   :  { %111 = shalt.err (!%p108_p7)
}
   0xf   :  { %18 = dma.hbm_to_vmem [thread:$0]  %s165_s1, 256, %s16_s10, [#allocation5]  }
  0x10   :  { %112 = dma.done.wait [#allocation5], 256  }
  0x11   :  { %113 = vsyncadd [#allocation5], 4294967040  ;;  %vm26_vm0 = vcmask 7168   ;;  %v37_v0 = vstv %s164_s0  ;;  %v115_v1 = vmov 0.0   ;;  %v28_v2 = vld [vmem:[#allocation4] sm:$0xff]  ;;  %v29_v3 = vld [vmem:[#allocation4 + $0x8] sm:$0xff] }
  0x12   :  { %27 = vst.msk [vmem:[%s166_s2] sm:$0xff] %vm26_vm0, %v115_v1  ;;  %76 = vrcp.f32 %v37_v0  ;;  %v30_v4 = vmax.f32 %v28_v2, 1e-06  ;;  %v31_v5 = vmax.f32 %v29_v3, 1e-06 }
  0x14   :  { %78 = vlog2.f32 %v30_v4 }
  0x15   :  { %80 = vlog2.f32 %v31_v5 }
  0x19   :  { %v44_v18 = vld [vmem:[%s166_s2] sm:$0xff] }
  0x1c   :  { %v77_v6 = vpop.eup %76 }
  0x1d   :  { %72 = vpush %v77_v6 }
  0x1e   :  { %v79_v7 = vpop.eup %78 }
  0x1f   :  { %v81_v8 = vpop.eup %80  ;;  %v34_v9 = vmul.f32 0.6931472, %v79_v7 }
  0x20   :  { %v36_v10 = vmul.f32 0.6931472, %v81_v8 }
  0x21   :  { %v38_v11 = vmul.f32 %v37_v0, %v34_v9 }
  0x22   :  { %v39_v12 = vmul.f32 %v37_v0, %v36_v10 }
  0x23   :  { %v40_v13 = vmul.f32 1.442695, %v38_v11 }
  0x24   :  { %v42_v14 = vmul.f32 1.442695, %v39_v12 }
  0x25   :  { %82 = vpow2.f32 %v40_v13 }
  0x26   :  { %84 = vpow2.f32 %v42_v14 }
  0x2f   :  { %v83_v15 = vpop.eup %82 }
  0x30   :  { %v85_v16 = vpop.eup %84 }
  0x31   :  { %v45_v17 = vadd.f32 %v85_v16, %v83_v15 }
  0x33   :  { %46 = vadd.xlane.f32.xlu0 %v45_v17 }
  0x4e   :  { %s73_s29 = spop %72 }
  0x4f   :  { %v62_v24 = vstv %s73_s29 }
  0xc0   :  { %v47_v19 = vpop.xlane.xlu0 %46 }
  0xc1   :  { %v48_v20 = vadd.f32 %v47_v19, %v44_v18 }
  0xc3   :  { %50 = vst.msk [vmem:[%s166_s2] sm:$0xff] %vm26_vm0, %v48_v20 }
  0xca   :  { %v58_v21 = vld [vmem:[%s166_s2] sm:$0xff] }
  0xcb   :  { %v59_v22 = vmul.f32 0.00390625, %v58_v21 }
  0xcd   :  { %86 = vlog2.f32 %v59_v22 }
  0xd7   :  { %v87_v23 = vpop.eup %86 }
  0xd8   :  { %v61_v25 = vmul.f32 0.6931472, %v87_v23 }
  0xda   :  { %v63_v26 = vmul.f32 %v62_v24, %v61_v25 }
  0xdc   :  { %v64_v27 = vmul.f32 1.442695, %v63_v26 }
  0xde   :  { %88 = vpow2.f32 %v64_v27 }
  0xe8   :  { %v89_v28 = vpop.eup %88 }
  0xe9   :  { %66 = vst.msk [vmem:[%s166_s2] sm:$0xff] %vm26_vm0, %v89_v28 }
  0xea   :  { %71 = vsyncpa [#allocation5], 1 }

</bundles_post_ra>
